<compile_context>
chip_gen: v7x
topology: tpu7x:2x2x1
jax: 0.10.0
libtpu: 0.0.40
codegen_flags: <defaults>
</compile_context>

<pallas_src>
import functools

import jax
import jax.numpy as jnp
from jax.experimental import pallas as pl
from jax.experimental.pallas import tpu as pltpu


def _round_up(n: int, m: int) -> int:
    return ((n + m - 1) // m) * m


def _chip_vmem_bytes() -> int:
    try:
        info = pltpu.get_tpu_info()
        v = getattr(info, "vmem_capacity_bytes", None)
        if v:
            return int(v)
    except Exception:
        pass
    return 64 * 1024 * 1024  # conservative (v7x-sized) fallback


def _tensorcores_per_device() -> int:
    try:
        d = jax.devices()[0]
        v = getattr(d, "num_cores", None)
        if v:
            return int(v)
    except Exception:
        pass
    return 1


def _vmem_estimate(L, TL, W, LPscr, lanes, isz):
    """Rough per-grid-step VMEM footprint in bytes."""
    return ((3 * L + LPscr + W) * lanes * isz  # x block (dbl-buf) + fill temp + scratch + window
            + 4 * TL * lanes * isz             # two outputs, double-buffered
            + 3 * TL * lanes * 4               # f32 acc / mean / res temporaries
            + (2 << 20))                       # slack


def _pick_lanes(N, cap, require_divisor, L, TL, W, LPscr, isz, vmem_budget,
                n_cores, nb):
    """Pick lane-tile width (multiple of 128) and padded lane count."""
    base = _round_up(max(N, 1), 128)
    cap = max(128, min(cap, base))
    hbm_per_lane = 3 * L * isz        # 1 input + 2 outputs per lane
    step_overhead = 350_000           # ~0.35us of HBM-equivalent bytes per step
    best = None
    for t in range(cap, 0, -128):
        if require_divisor and N % t != 0:
            continue
        if _vmem_estimate(L, TL, W, LPscr, t, isz) > vmem_budget:
            continue
        npad = N if require_divisor else _round_up(N, t)
        chunks = npad // t
        cost = npad * hbm_per_lane + chunks * nb * step_overhead
        if n_cores >= 2 and chunks > 1 and chunks % 2 == 1:
            cost += cost // 4         # prefer even megacore split (v7x)
        if best is None or cost < best[0] or (cost == best[0] and t > best[1]):
            best = (cost, t, npad)
    if best is None:                  # last resort (still correct)
        return 128, (N if require_divisor else _round_up(N, 128))
    return best[1], best[2]


def _decomp_pallas_call(BP, L, NP, lanes, TL, nb, k, in_dtype, out_dtype,
                        vmem_limit):
    p = (k - 1) // 2
    W = TL + 2 * p
    LPscr = _round_up(nb * TL + 2 * p, 8)
    inv_k = 1.0 / float(k)

    def kernel(x_ref, res_ref, mean_ref, xp_ref):
        i = pl.program_id(2)  # time-block index (sequential axis)

        # Once per (batch, lane-chunk): build the edge-replicated series in
        # VMEM scratch so every time block sees a uniform 0/1 band.
        @pl.when(i == 0)
        def _fill_padded():
            xs = x_ref[...]                                        # (L, lanes)
            xp_ref[pl.ds(p, L), :] = xs
            if p > 0:
                xp_ref[pl.ds(0, p), :] = jnp.broadcast_to(
                    xs[0:1, :], (p, lanes))
            tail = LPscr - (p + L)
            if tail > 0:
                xp_ref[pl.ds(p + L, tail), :] = jnp.broadcast_to(
                    xs[L - 1:L, :], (tail, lanes))

        # Small band matrix (TL, W) with entries exactly 0/1 in the input
        # dtype, built on the VPU each step (cheap; no HBM operand at all).
        rows = jax.lax.broadcasted_iota(jnp.int32, (TL, W), 0)
        cols = jax.lax.broadcasted_iota(jnp.int32, (TL, W), 1)
        band = jnp.logical_and(cols >= rows, cols < rows + k).astype(in_dtype)

        t0 = pl.multiple_of(i * TL, 8)
        win = xp_ref[pl.ds(t0, W), :]                              # (W, lanes)
        acc = jnp.dot(band, win, preferred_element_type=jnp.float32)
        mean = acc * inv_k                                         # scale in f32
        xblk = win[p:p + TL, :].astype(jnp.float32)                # original x rows
        mean_ref[...] = mean.astype(out_dtype)
        res_ref[...] = (xblk - mean).astype(out_dtype)

    return pl.pallas_call(
        kernel,
        out_shape=(
            jax.ShapeDtypeStruct((BP, L, NP), out_dtype),
            jax.ShapeDtypeStruct((BP, L, NP), out_dtype),
        ),
        grid=(BP, NP // lanes, nb),
        in_specs=[pl.BlockSpec((None, L, lanes), lambda b, j, i: (b, 0, j))],
        out_specs=(
            pl.BlockSpec((None, TL, lanes), lambda b, j, i: (b, i, j)),
            pl.BlockSpec((None, TL, lanes), lambda b, j, i: (b, i, j)),
        ),
        scratch_shapes=[pltpu.VMEM((LPscr, lanes), in_dtype)],
        compiler_params=pltpu.CompilerParams(
            dimension_semantics=("parallel", "parallel", "arbitrary"),
            vmem_limit_bytes=vmem_limit,
        ),
    )


def series_decomp(x: jax.Array, kernel_size: int):
    """x: (B, L, C).  Returns (res, moving_mean), each (B, L, C)."""
    B, L, C = x.shape
    k = int(kernel_size)
    # Odd kernel keeps the output time length == L (standard Autoformer/DLinear
    # configs); the torch module would shrink L for even kernels.
    assert k % 2 == 1 and k >= 1, "series_decomp: use an odd kernel_size"

    in_dtype = x.dtype
    out_dtype = x.dtype
    isz = jnp.dtype(in_dtype).itemsize
    p = (k - 1) // 2

    # Time tiling: band width is TL + (k-1); TL capped at 128 keeps the banded
    # matmul memory-bound even for f32 operands on v5e.
    TL = min(128, _round_up(L, 8))
    nb = -(-L // TL)
    W = TL + 2 * p
    LPscr = _round_up(nb * TL + 2 * p, 8)

    chip_vmem = _chip_vmem_bytes()
    lane_cap = 1024 if chip_vmem >= 96 * 1024 * 1024 else 512
    vmem_budget = int(0.65 * chip_vmem)
    n_cores = _tensorcores_per_device()

    direct = (C % 128 == 0)
    if direct:
        # Keep (B, L, C): lanes already dense, zero wrapper layout traffic.
        lanes, NP = _pick_lanes(C, lane_cap, True, L, TL, W, LPscr, isz,
                                vmem_budget, n_cores, nb)
        xk, BP = x, B
    else:
        # Small / awkward C: flatten to (L, B*C), pad lanes to the lane tile.
        N = B * C
        lanes, NP = _pick_lanes(N, lane_cap, False, L, TL, W, LPscr, isz,
                                vmem_budget, n_cores, nb)
        xt = jnp.transpose(x, (1, 0, 2)).reshape(L, N)
        if NP != N:
            xt = jnp.pad(xt, ((0, 0), (0, NP - N)))
        xk, BP = xt.reshape(1, L, NP), 1

    est = _vmem_estimate(L, TL, W, LPscr, lanes, isz)
    vmem_limit = int(min(int(0.85 * chip_vmem),
                         max(32 * 1024 * 1024, int(est * 1.25))))

    res, mean = _decomp_pallas_call(BP, L, NP, lanes, TL, nb, k,
                                    in_dtype, out_dtype, vmem_limit)(xk)

    if direct:
        return res, mean

    N = B * C

    def _unpack(y):
        return jnp.transpose(y[0, :, :N].reshape(L, B, C), (1, 0, 2))

    return _unpack(res), _unpack(mean)


def _series_decomp_ref(x: jax.Array, kernel_size: int):
    """Pure-JAX reference mirroring the PyTorch module."""
    p = (kernel_size - 1) // 2
    front = jnp.repeat(x[:, :1, :], p, axis=1)
    end = jnp.repeat(x[:, -1:, :], p, axis=1)
    padded = jnp.concatenate([front, x, end], axis=1)  # (B, L+2p, C)
    L = x.shape[1]
    win = jnp.stack([padded[:, w:w + L, :] for w in range(kernel_size)], axis=0)
    mean = jnp.mean(win, axis=0)
    return x - mean, mean


def _check(B, L, C, k, key):
    x = jax.random.normal(key, (B, L, C), dtype=jnp.float32)
    fn = jax.jit(functools.partial(series_decomp, kernel_size=k))
    res, mean = fn(x)
    jax.block_until_ready(res)
    jax.block_until_ready(mean)
    res_ref, mean_ref = _series_decomp_ref(x, k)
    assert res.shape == (B, L, C) and mean.shape == (B, L, C)
    assert res.dtype == x.dtype and mean.dtype == x.dtype
    assert jnp.allclose(mean, mean_ref, atol=1e-4, rtol=1e-4), \
        float(jnp.max(jnp.abs(mean - mean_ref)))
    assert jnp.allclose(res, res_ref, atol=1e-4, rtol=1e-4), \
        float(jnp.max(jnp.abs(res - res_ref)))


if __name__ == "__main__":
    key = jax.random.PRNGKey(0)
    k0, k1, k2 = jax.random.split(key, 3)

    _check(B=2, L=16, C=8, k=5, key=k0)     # small C  -> flattened lane path
    _check(B=2, L=16, C=128, k=5, key=k1)   # C%128==0 -> direct (B,L,C) path
    _check(B=2, L=160, C=8, k=25, key=k2)   # multi time-block + partial last tile

    print("KERNEL_OK")
</pallas_src>

<mosaic_0001>
module attributes {stable_mosaic.version = 11 : i64} {
  func.func @kernel(%arg0: i32, %arg1: i32, %arg2: i32, %arg3: memref<1x16x128xf32, #tpu.memory_space<vmem>>, %arg4: memref<1x16x128xf32, #tpu.memory_space<vmem>>, %arg5: memref<1x16x128xf32, #tpu.memory_space<vmem>>, %arg6: memref<24x128xf32, #tpu.memory_space<vmem>>) attributes {dimension_semantics = [#tpu.dimension_semantics<parallel>, #tpu.dimension_semantics<parallel>, #tpu.dimension_semantics<arbitrary>], iteration_bounds = array<i64: 1, 1, 1>, scalar_prefetch = 0 : i64, scratch_operands = 1 : i64, tpu.core_type = #tpu.core_type<tc>, window_params = [{transform_indices = @transform_0, window_bounds = array<i64: 1, 16, 128>}, {transform_indices = @transform_1, window_bounds = array<i64: 1, 16, 128>}, {transform_indices = @transform_2, window_bounds = array<i64: 1, 16, 128>}]} {
    %c0_i32 = arith.constant 0 : i32
    %0 = arith.cmpi eq, %arg2, %c0_i32 : i32
    %1 = arith.extui %0 : i1 to i32
    %c0_i32_0 = arith.constant 0 : i32
    %2 = arith.cmpi ne, %1, %c0_i32_0 : i32
    scf.if %2 {
      %c0_8 = arith.constant 0 : index
      %c0_9 = arith.constant 0 : index
      %c0_10 = arith.constant 0 : index
      %27 = vector.load %arg3[%c0_8, %c0_9, %c0_10] : memref<1x16x128xf32, #tpu.memory_space<vmem>>, vector<1x16x128xf32>
      %28 = vector.shape_cast %27 : vector<1x16x128xf32> to vector<16x128xf32>
      %c2 = arith.constant 2 : index
      %c0_11 = arith.constant 0 : index
      %29 = vector.load %arg6[%c2, %c0_11] : memref<24x128xf32, #tpu.memory_space<vmem>>, vector<16x128xf32>
      tpu.vector_store %arg6[%c2, %c0_11], %28 {strides = array<i32>} : memref<24x128xf32, #tpu.memory_space<vmem>>, vector<16x128xf32>,
      %30 = vector.extract_strided_slice %28 {offsets = [0, 0], sizes = [1, 128], strides = [1, 1]} : vector<16x128xf32> to vector<1x128xf32>
      %31 = vector.shape_cast %30 : vector<1x128xf32> to vector<1x128xf32>
      %32 = vector.broadcast %31 : vector<1x128xf32> to vector<2x128xf32>
      %c0_12 = arith.constant 0 : index
      %c0_13 = arith.constant 0 : index
      %33 = vector.load %arg6[%c0_12, %c0_13] : memref<24x128xf32, #tpu.memory_space<vmem>>, vector<2x128xf32>
      tpu.vector_store %arg6[%c0_12, %c0_13], %32 {strides = array<i32>} : memref<24x128xf32, #tpu.memory_space<vmem>>, vector<2x128xf32>,
      %34 = vector.extract_strided_slice %28 {offsets = [15, 0], sizes = [1, 128], strides = [1, 1]} : vector<16x128xf32> to vector<1x128xf32>
      %35 = vector.shape_cast %34 : vector<1x128xf32> to vector<1x128xf32>
      %36 = vector.broadcast %35 : vector<1x128xf32> to vector<6x128xf32>
      %c18 = arith.constant 18 : index
      %c0_14 = arith.constant 0 : index
      %37 = vector.load %arg6[%c18, %c0_14] : memref<24x128xf32, #tpu.memory_space<vmem>>, vector<6x128xf32>
      tpu.vector_store %arg6[%c18, %c0_14], %36 {strides = array<i32>} : memref<24x128xf32, #tpu.memory_space<vmem>>, vector<6x128xf32>,
    } else {
    }
    %3 = tpu.iota {dimensions = array<i32: 0>} : vector<16x20xi32>
    %4 = tpu.iota {dimensions = array<i32: 1>} : vector<16x20xi32>
    %5 = arith.cmpi sge, %4, %3 : vector<16x20xi32>
    %c5_i32 = arith.constant 5 : i32
    %6 = vector.broadcast %c5_i32 : i32 to vector<16x20xi32>
    %7 = arith.addi %3, %6 : vector<16x20xi32>
    %8 = arith.cmpi slt, %4, %7 : vector<16x20xi32>
    %9 = arith.andi %5, %8 : vector<16x20xi1>
    %10 = arith.extui %9 : vector<16x20xi1> to vector<16x20xi32>
    %11 = arith.sitofp %10 : vector<16x20xi32> to vector<16x20xf32>
    %c16_i32 = arith.constant 16 : i32
    %12 = arith.muli %arg2, %c16_i32 : i32
    %13 = tpu.assume_multiple %12, 8 : i32
    %14 = arith.index_cast %13 : i32 to index
    %c0 = arith.constant 0 : index
    %15 = vector.load %arg6[%14, %c0] : memref<24x128xf32, #tpu.memory_space<vmem>>, vector<20x128xf32>
    %cst = arith.constant dense<0.000000e+00> : vector<16x128xf32>
    %16 = tpu.matmul %11, %15, %cst {dimension_numbers = #tpu.dot_dimension_numbers<[1], [0], [0], [1], [0, 0, 1, 1], [], []>} : vector<16x20xf32>, vector<20x128xf32>, vector<16x128xf32> -> vector<16x128xf32>
    %cst_1 = arith.constant 2.000000e-01 : f32
    %17 = vector.broadcast %cst_1 : f32 to vector<16x128xf32>
    %18 = arith.mulf %16, %17 : vector<16x128xf32>
    %19 = vector.extract_strided_slice %15 {offsets = [2, 0], sizes = [16, 128], strides = [1, 1]} : vector<20x128xf32> to vector<16x128xf32>
    %c0_2 = arith.constant 0 : index
    %c0_3 = arith.constant 0 : index
    %c0_4 = arith.constant 0 : index
    %20 = vector.load %arg5[%c0_2, %c0_3, %c0_4] : memref<1x16x128xf32, #tpu.memory_space<vmem>>, vector<1x16x128xf32>
    %21 = vector.shape_cast %20 : vector<1x16x128xf32> to vector<16x128xf32>
    %22 = vector.shape_cast %18 : vector<16x128xf32> to vector<1x16x128xf32>
    tpu.vector_store %arg5[%c0_2, %c0_3, %c0_4], %22 {strides = array<i32>} : memref<1x16x128xf32, #tpu.memory_space<vmem>>, vector<1x16x128xf32>,
    %23 = arith.subf %19, %18 : vector<16x128xf32>
    %c0_5 = arith.constant 0 : index
    %c0_6 = arith.constant 0 : index
    %c0_7 = arith.constant 0 : index
    %24 = vector.load %arg4[%c0_5, %c0_6, %c0_7] : memref<1x16x128xf32, #tpu.memory_space<vmem>>, vector<1x16x128xf32>
    %25 = vector.shape_cast %24 : vector<1x16x128xf32> to vector<16x128xf32>
    %26 = vector.shape_cast %23 : vector<16x128xf32> to vector<1x16x128xf32>
    tpu.vector_store %arg4[%c0_5, %c0_6, %c0_7], %26 {strides = array<i32>} : memref<1x16x128xf32, #tpu.memory_space<vmem>>, vector<1x16x128xf32>,
    return
  }
  func.func @transform_0(%arg0: i32, %arg1: i32, %arg2: i32) -> (i32, i32, i32) {
    %c0_i32 = arith.constant 0 : i32
    %c0_i32_0 = arith.constant 0 : i32
    return %arg0, %c0_i32, %arg1 : i32, i32, i32
  }
  func.func @transform_1(%arg0: i32, %arg1: i32, %arg2: i32) -> (i32, i32, i32) {
    %c0_i32 = arith.constant 0 : i32
    return %arg0, %arg2, %arg1 : i32, i32, i32
  }
  func.func @transform_2(%arg0: i32, %arg1: i32, %arg2: i32) -> (i32, i32, i32) {
    %c0_i32 = arith.constant 0 : i32
    return %arg0, %arg2, %arg1 : i32, i32, i32
  }
}

</mosaic_0001>

<bundles_post_ra>
// kernel: series_decomp.1
= control target key start
LH: loop header
LB: loop body
LE: loop exit
PB: predicated region body
PF: predicated region fallthrough
CT: control target
= control target key end

     0   :  { %v18_v0 = vlaneseq  ;;  %vm50_vm2 = vcmask 162816   ;;  %v187_v11 = vmov 0.0   ;;  %vm57_vm6 = vcmask 1043456   ;;  %s226_s0 = inlined_call_operand.vmem [shape: f32[1,16,128], index: 0, kind: input, shape index: {}]   ;;  %s227_s2 = inlined_call_operand.vmem [shape: f32[1,16,128], index: 2, kind: output, shape index: {1}]   ;;  %s228_s1 = inlined_call_operand.vmem [shape: f32[1,16,128], index: 1, kind: output, shape index: {0}]  }
   0x1   :  { %v14_v1 = vld [vmem:[%s226_s0] sm:$0xff]  ;;  %v15_v2 = vld [vmem:[%s226_s0 + $0x8] sm:$0xff]  ;;  %vm142_vm8 = vcmask 1041408  }
   0x2   :  { %16 = vst [vmem:[#allocation2 + $0x2] sm:$0xff] %v14_v1  ;;  %17 = vst [vmem:[#allocation2 + $0xa] sm:$0xff] %v15_v2  ;;  %v19_v3 = vshrl.u32 %v18_v0, 7  ;;  %v32_v4 = vand.u32 127, %v18_v0 }
   0x4   :  { %v20_v5 = vsub.s32 0, %v19_v3  ;;  %v25_v6 = vsub.s32 7, %v19_v3  ;;  %vm33_vm0 = vcmp.ge.s32.totalorder %v32_v4, %v19_v3  ;;  %v35_v7 = vadd.s32 5, %v19_v3 }
   0x5   :  { %v30_v10 = vadd.s32 8, %v19_v3 }
   0x6   :  { %v21_v8 = vrot.slane %v14_v1, %v20_v5  ;;  %v26_v9 = vrot.slane %v15_v2, %v25_v6  ;;  %vm37_vm1 = vcmp.lt.s32.totalorder %v32_v4, %v35_v7 }
   0x7   :  { %vm39_vm3 = vmand %vm33_vm0, %vm37_vm1  ;;  %v36_v13 = vadd.s32 5, %v30_v10  ;;  %vm34_vm4 = vcmp.ge.s32.totalorder %v32_v4, %v30_v10 }
   0x8   :  { %22 = vst [vmem:[#allocation2] sm:$0x3] %v21_v8  ;;  %27 = vst [vmem:[#allocation2 + $0x12] sm:$0x3f] %v26_v9  ;;  %v163_v12 = vsel %vm39_vm3, 1.0, %v187_v11 }
   0x9   :  { %179 = vmatprep.mubr.msk.f32.mxu0 %vm50_vm2, %v163_v12  ;;  %v48_v14 = vld [vmem:[#allocation2 + $0x8] sm:$0xff]  ;;  %vm38_vm5 = vcmp.lt.s32.totalorder %v32_v4, %v36_v13 }
   0xa   :  { %vm40_vm7 = vmand %vm34_vm4, %vm38_vm5 }
   0xb   :  { %v164_v18 = vsel %vm40_vm7, 1.0, %v187_v11 }
   0xf   :  { %v47_v15 = vld [vmem:[#allocation2] sm:$0xff]  ;;  %v49_v17 = vld [vmem:[#allocation2 + $0x10] sm:$0xf] }
  0x10   :  { %v182_v16 = vpack.c.bf16 %v48_v14, %v47_v15 }
  0x12   :  { %183 = vmatprep.subr.bf16.mxu0 %v182_v16 }
  0x13   :  { %185 = vmatpush3.bf16.msra.mxu0 %v182_v16 }
  0x14   :  { %177 = vmatprep.subr.msk.mxu0 %vm57_vm6, %v49_v17 }
  0x17   :  { %178 = vmatpush3.msk.msra.mxu0 %vm57_vm6, %v49_v17 }
  0x18   :  { %180 = vmatmul.mubr.msk.f32.vlgmr.msra.gmra.mrb[0].mxu0 %vm50_vm2, %v164_v18 }
  0xeb   :  { %v181_v19 = vpop.f32.mrb[0].mxu0 }
  0xec   :  { %v137_v20 = vmul.f32 0.2, %v181_v19  ;;  %v127_v21 = vpop.f32.mrb[1].mxu0 }
  0xed   :  { %v136_v22 = vmul.f32 0.2, %v127_v21 }
  0xee   :  { %139 = vst [vmem:[%s227_s2 + $0x8] sm:$0xff] %v137_v20  ;;  %v144_v23 = vrot.slane %v137_v20, 6 }
  0xef   :  { %138 = vst [vmem:[%s227_s2] sm:$0xff] %v136_v22  ;;  %v143_v24 = vrot.slane %v136_v22, 6 }
  0xf0   :  { %v151_v25 = vsub.f32 %v49_v17, %v144_v23 }
  0xf1   :  { %v145_v26 = vsel %vm142_vm8, %v143_v24, %v144_v23  ;;  %v149_v27 = vsub.f32 %v47_v15, %v143_v24 }
  0xf2   :  { %154 = vst [vmem:[%s228_s1 + $0xe] sm:$0x3] %v151_v25  ;;  %v150_v28 = vsub.f32 %v48_v14, %v145_v26 }
  0xf3   :  { %152 = vst [vmem:[%s228_s1 - $0x2] sm:$0xfc] %v149_v27 }
  0xf4   :  { %153 = vst [vmem:[%s228_s1 + $0x6] sm:$0xff] %v150_v28 }

</bundles_post_ra>
